<compile_context>
chip_gen: v5e
topology: v5e:2x2
jax: 0.10.0
libtpu: 0.0.40
codegen_flags: <defaults>
</compile_context>

<pallas_src>
import jax
import jax.numpy as jnp
from jax.experimental import pallas as pl
from jax.experimental.pallas import tpu as pltpu

_LANE = 128


def _h_sigmoid_kernel(x_ref, o_ref):
    # relu6(x + 3) / 6 == clamp(x + 3, 0, 6) * (1/6); compute in f32, cast on store.
    x = x_ref[...].astype(jnp.float32)
    y = jnp.clip(x + 3.0, 0.0, 6.0) * (1.0 / 6.0)
    o_ref[...] = y.astype(o_ref.dtype)


def _h_sigmoid_jnp(x: jax.Array) -> jax.Array:
    """Plain-JAX path for sub-vreg tails (< 128 elements); matches kernel math."""
    y = jnp.clip(x.astype(jnp.float32) + 3.0, 0.0, 6.0) * (1.0 / 6.0)
    return y.astype(x.dtype)


def _pick_width(n128: int) -> int:
    """Widest lane-dense slab width (multiple of 128) dividing n128."""
    for w in (8192, 4096, 2048, 1024, 512, 256, 128):
        if w <= n128 and n128 % w == 0:
            return w
    return _LANE


def _h_sigmoid_pallas_flat(
    x_flat: jax.Array,
    *,
    target_block_bytes: int,
    donate: bool,
) -> jax.Array:
    """Run the kernel on a flat array whose length is a multiple of 128."""
    n = x_flat.shape[0]
    dtype = x_flat.dtype
    itemsize = jnp.dtype(dtype).itemsize
    # sublane packing: 8 rows for 32-bit, 16 for 16-bit, 32 for 8-bit dtypes
    sublane_mult = 8 * max(1, 4 // itemsize)

    width = _pick_width(n)
    rows = n // width
    x2d = x_flat.reshape(rows, width)

    if rows <= sublane_mult:
        # Tiny array: single full-extent block (full dims are always legal).
        block_rows = rows
    else:
        # ~target_block_bytes per block, rounded to the dtype's sublane packing.
        by_bytes = max(
            sublane_mult,
            (target_block_bytes // (width * itemsize)) // sublane_mult * sublane_mult,
        )
        # Guarantee >= ~4 grid steps so in/out DMA overlap and both v7x TCs get work.
        quarter = max(sublane_mult, (rows // 4) // sublane_mult * sublane_mult)
        block_rows = min(by_bytes, quarter, rows)

    grid = (pl.cdiv(rows, block_rows),)

    out2d = pl.pallas_call(
        _h_sigmoid_kernel,
        out_shape=jax.ShapeDtypeStruct((rows, width), dtype),
        grid_spec=pltpu.PrefetchScalarGridSpec(
            num_scalar_prefetch=0,
            grid=grid,
            in_specs=[pl.BlockSpec((block_rows, width), lambda i: (i, 0))],
            out_specs=pl.BlockSpec((block_rows, width), lambda i: (i, 0)),
        ),
        compiler_params=pltpu.CompilerParams(
            dimension_semantics=("parallel",),
            # 4 MiB blocks x 2 arrays x 2 pipeline buffers = ~16 MiB; raise the
            # scoped-VMEM limit so v5e's 16 MiB default is not a cliff while
            # staying well under v7x's 64 MiB physical VMEM.
            vmem_limit_bytes=48 * 1024 * 1024,
        ),
        cost_estimate=pl.CostEstimate(
            flops=4 * n,
            transcendentals=0,
            bytes_accessed=2 * n * itemsize,
        ),
        input_output_aliases=({0: 0} if donate else {}),
    )(x2d)
    return out2d.reshape(-1)


def h_sigmoid(
    x: jax.Array,
    *,
    target_block_bytes: int = 4 * 1024 * 1024,
    donate_input: bool = False,
) -> jax.Array:
    """Elementwise h_sigmoid (relu6(x+3)/6) via a tiled Pallas kernel. Any shape."""
    orig_shape = x.shape
    n = x.size
    if n == 0:
        return x

    x_flat = x.reshape(-1)  # free for contiguous inputs
    n_aligned = (n // _LANE) * _LANE

    if n_aligned == 0:
        # Sub-vreg-sized array: not worth a kernel launch.
        return _h_sigmoid_jnp(x)

    if n_aligned == n:
        # Common case: zero-copy lane-dense slab through the kernel.
        out_flat = _h_sigmoid_pallas_flat(
            x_flat, target_block_bytes=target_block_bytes, donate=donate_input
        )
        return out_flat.reshape(orig_shape)

    # Ragged case: kernel on the 128-aligned prefix (no full-array pad),
    # plain-jnp on the (< 128 element) tail, stitch the tail back.
    head = _h_sigmoid_pallas_flat(
        x_flat[:n_aligned], target_block_bytes=target_block_bytes, donate=False
    )
    tail = _h_sigmoid_jnp(x_flat[n_aligned:])
    return jnp.concatenate([head, tail]).reshape(orig_shape)


def h_sigmoid_ref(x: jax.Array) -> jax.Array:
    return (jnp.clip(x.astype(jnp.float32) + 3.0, 0.0, 6.0) / 6.0).astype(x.dtype)


if __name__ == "__main__":
    key = jax.random.PRNGKey(0)

    # NCHW input like the PyTorch module would see: batch=2, channels=4, 16x16.
    x = jax.random.normal(key, (2, 4, 16, 16), dtype=jnp.float32) * 4.0
    out = jax.block_until_ready(h_sigmoid(x))
    ref = h_sigmoid_ref(x)
    assert out.shape == x.shape and out.dtype == x.dtype
    assert jnp.allclose(out, ref, atol=1e-6, rtol=1e-6)

    # Ragged (non-128-divisible) shape exercises the prefix + tail path.
    x2 = jax.random.normal(jax.random.PRNGKey(1), (3, 5, 7, 11), dtype=jnp.float32) * 4.0
    out2 = jax.block_until_ready(h_sigmoid(x2))
    ref2 = h_sigmoid_ref(x2)
    assert out2.shape == x2.shape and out2.dtype == x2.dtype
    assert jnp.allclose(out2, ref2, atol=1e-6, rtol=1e-6)

    # bf16 input: compute-in-f32 path, cast on store.
    x3 = jax.random.normal(jax.random.PRNGKey(2), (2, 8, 8, 16), dtype=jnp.bfloat16) * 4.0
    out3 = jax.block_until_ready(h_sigmoid(x3))
    ref3 = h_sigmoid_ref(x3)
    assert out3.shape == x3.shape and out3.dtype == x3.dtype
    assert jnp.allclose(out3.astype(jnp.float32), ref3.astype(jnp.float32), atol=1e-2, rtol=1e-2)

    print("KERNEL_OK")
</pallas_src>

<mosaic_0001>
module attributes {stable_mosaic.version = 11 : i64} {
  func.func @_h_sigmoid_kernel(%arg0: i32, %arg1: memref<1x2048xf32, #tpu.memory_space<vmem>>, %arg2: memref<1x2048xf32, #tpu.memory_space<vmem>>) attributes {dimension_semantics = [#tpu.dimension_semantics<parallel>], iteration_bounds = array<i64: 1>, scalar_prefetch = 0 : i64, scratch_operands = 0 : i64, tpu.core_type = #tpu.core_type<tc>, window_params = [{transform_indices = @transform_0, window_bounds = array<i64: 1, 2048>}, {transform_indices = @transform_1, window_bounds = array<i64: 1, 2048>}]} {
    %c0 = arith.constant 0 : index
    %c0_0 = arith.constant 0 : index
    %0 = vector.load %arg1[%c0, %c0_0] : memref<1x2048xf32, #tpu.memory_space<vmem>>, vector<1x2048xf32>
    %cst = arith.constant 3.000000e+00 : f32
    %1 = vector.broadcast %cst : f32 to vector<1x2048xf32>
    %2 = arith.addf %0, %1 : vector<1x2048xf32>
    %cst_1 = arith.constant 0.000000e+00 : f32
    %cst_2 = arith.constant 6.000000e+00 : f32
    %3 = vector.broadcast %cst_1 : f32 to vector<1x2048xf32>
    %4 = arith.maximumf %3, %2 : vector<1x2048xf32>
    %5 = vector.broadcast %cst_2 : f32 to vector<1x2048xf32>
    %6 = arith.minimumf %5, %4 : vector<1x2048xf32>
    %cst_3 = arith.constant 0.166666672 : f32
    %7 = vector.broadcast %cst_3 : f32 to vector<1x2048xf32>
    %8 = arith.mulf %6, %7 : vector<1x2048xf32>
    %c0_4 = arith.constant 0 : index
    %c0_5 = arith.constant 0 : index
    %9 = vector.load %arg2[%c0_4, %c0_5] : memref<1x2048xf32, #tpu.memory_space<vmem>>, vector<1x2048xf32>
    tpu.vector_store %arg2[%c0_4, %c0_5], %8 {strides = array<i32>} : memref<1x2048xf32, #tpu.memory_space<vmem>>, vector<1x2048xf32>,
    return
  }
  func.func @transform_0(%arg0: i32) -> (i32, i32) {
    %c0_i32 = arith.constant 0 : i32
    %c0_i32_0 = arith.constant 0 : i32
    return %arg0, %c0_i32 : i32, i32
  }
  func.func @transform_1(%arg0: i32) -> (i32, i32) {
    %c0_i32 = arith.constant 0 : i32
    %c0_i32_0 = arith.constant 0 : i32
    return %arg0, %c0_i32 : i32, i32
  }
}

</mosaic_0001>

<bundles_post_ra>
// kernel: tpu_custom_call.1
= control target key start
LH: loop header
LB: loop body
LE: loop exit
PB: predicated region body
PF: predicated region fallthrough
CT: control target
= control target key end

     0   :  { %6 = vsyncpa [#allocation3], 0  ;;  %s124_s0 = inlined_call_operand.hbm [shape: f32[1,2048], index: 0, kind: input, shape index: {}]   ;;  %s125_s1 = inlined_call_operand.hbm [shape: f32[1,2048], index: 1, kind: output, shape index: {}]  }
   0x1   :  { %7 = vsyncpa [#allocation4], 0  ;;  %s13_s8 = sshll.u32 %s124_s0, 4  ;;  %s106_s9 = smov [#allocation2]   ;;  %s14_s8 = int_to_ptr.hbm [resolvable:$true] %s13_s8 }
   0x2   :  { %s15_s10 = sshll.u32 %s106_s9, 4  ;;  %s16_s10 = int_to_ptr.vmem [resolvable:$true] %s15_s10 }
   0x3   :  { %18 = dma.hbm_to_vmem [thread:$0]  %s14_s8, 256, %s16_s10, [#allocation3]  }
   0x4   :  { %102 = dma.done.wait [#allocation3], 256  }
   0x5   :  { %103 = vsyncadd [#allocation3], 4294967040  ;;  %v23_v0 = vld [vmem:[#allocation2] sm:$0xff]  ;;  %v24_v1 = vld [vmem:[#allocation2 + $0x8] sm:$0xff]  ;;  %s107_s11 = smov [#allocation5]   ;;  %s42_s0 = sshll.u32 %s125_s1, 4  ;;  %s43_s0 = int_to_ptr.hbm [resolvable:$true] %s42_s0 }
   0x6   :  { %v25_v2 = vadd.f32 3.0, %v23_v0  ;;  %v26_v3 = vadd.f32 3.0, %v24_v1  ;;  %s40_s12 = sshll.u32 %s107_s11, 4  ;;  %s41_s12 = int_to_ptr.vmem [resolvable:$true] %s40_s12 }
   0x8   :  { %v27_v4 = vmax.f32 %v25_v2, 0.0  ;;  %v28_v5 = vmax.f32 %v26_v3, 0.0 }
   0xa   :  { %v29_v6 = vmin.f32 %v27_v4, 6.0  ;;  %v30_v7 = vmin.f32 %v28_v5, 6.0 }
   0xc   :  { %v31_v8 = vmul.f32 0.16666667, %v29_v6  ;;  %v32_v9 = vmul.f32 0.16666667, %v30_v7 }
   0xe   :  { %33 = vst [vmem:[#allocation5] sm:$0xff] %v31_v8 }
   0xf   :  { %34 = vst [vmem:[#allocation5 + $0x8] sm:$0xff] %v32_v9 }
  0x10   :  { %45 = dma.vmem_to_hbm [thread:$0]  %s41_s12, 256, %s43_s0, [#allocation4]  }
  0x11   :  { %104 = dma.done.wait [#allocation4], 256  }
  0x12   :  { %105 = vsyncadd [#allocation4], 4294967040 }
  0x13   :  { %50 = vsyncpa [#allocation3], 1 }
  0x14   :  { %51 = vsyncpa [#allocation4], 1 }

</bundles_post_ra>
